<compile_context>
chip_gen: v7x
topology: tpu7x:2x2x1
jax: 0.10.0
libtpu: 0.0.40
codegen_flags: <defaults>
</compile_context>

<pallas_src>
import functools

import jax
import jax.numpy as jnp
from jax.experimental import pallas as pl
from jax.experimental.pallas import tpu as pltpu


def _round_up(x, m):
    return ((x + m - 1) // m) * m


def _largest_divisor_at_most(n, cap):
    cap = max(1, min(n, cap))
    for d in range(cap, 0, -1):
        if n % d == 0:
            return d
    return 1


def _maybe_vmem_limit(est_bytes):
    """Raise the scoped-VMEM limit only when the block working set needs it; keep the
    request below v7x's 64 MiB physical per-TC VMEM."""
    default_limit = 32 * 1024 * 1024
    if est_bytes <= default_limit:
        return {}
    return {"vmem_limit_bytes": int(min(est_bytes * 5 // 4, 60 * 1024 * 1024))}


def _softmax_over_queries(scores):
    """softmax over axis=1 (the query axis). All-f32 elementwise math (v5e-safe)."""
    m = jnp.max(scores, axis=1, keepdims=True)
    e = jnp.exp(scores - m)
    denom = jnp.sum(e, axis=1, keepdims=True)
    # Full-precision reciprocal; still on the EUP slot, off the VALU critical path.
    return e * pl.reciprocal(denom, approx=False)


def _self_attention_single_kernel(x_ref, wqk_ref, wv_ref, o_ref, *, compute_dtype):
    """Whole key axis in one step: x read once; q', scores, softmax, context fused.

    x_ref  : (BB, S, E)   one batch block of x (queries AND keys/values)
    wqk_ref: (E, E)       (wq / sqrt(key_dim)) @ wk^T       (resident)
    wv_ref : (E, KP)      wv zero-padded so KP % 128 == 0   (resident)
    o_ref  : (BB, S, KP)  lane-dense output block
    """
    BB, S, E = x_ref.shape
    KP = wv_ref.shape[1]
    cd = compute_dtype

    xb = x_ref[...]                                   # single load of the block
    x2d = xb.reshape(BB * S, E).astype(cd)

    # q' = x @ Wqk : one fused (BB*S, E) x (E, E) MXU matmul per batch block.
    qp = jnp.dot(x2d, wqk_ref[...].astype(cd),
                 preferred_element_type=jnp.float32).reshape(BB, S, E)

    # scores[b, i, j] = <q'[b, i, :], x[b, j, :]>  (contraction over E; shared last
    # dim maps to the MXU trans_b path, no materialized k transpose).
    scores = jnp.einsum('bqe,bke->bqk', qp.astype(cd), xb.astype(cd),
                        preferred_element_type=jnp.float32)        # (BB, S, S)

    attn = _softmax_over_queries(scores)              # softmax over dim=1 (queries)

    # V hoist: context = attn @ x (keys contracted), then out = context @ wv.
    ctx = jnp.einsum('bqk,bke->bqe', attn.astype(cd), xb.astype(cd),
                     preferred_element_type=jnp.float32)           # (BB, S, E)
    out = jnp.dot(ctx.reshape(BB * S, E).astype(cd), wv_ref[...].astype(cd),
                  preferred_element_type=jnp.float32)
    o_ref[...] = out.reshape(BB, S, KP).astype(o_ref.dtype)


def _self_attention_tiled_kernel(xq_ref, xkv_ref, wqk_ref, wv_ref, o_ref,
                                 qp_ref, ctx_ref, *, compute_dtype):
    """Key axis tiled over grid axis 1 (reduction, "arbitrary").

    xq_ref : (BB, S,  E)  full-sequence x block (queries); constant over kv
    xkv_ref: (BB, TK, E)  key/value chunk of x
    wqk_ref: (E, E)       folded Q/K weight (resident)
    wv_ref : (E, KP)      padded V weight (resident)
    o_ref  : (BB, S, KP)  output block (constant over kv; written at finalize)
    qp_ref : (BB, S, E)   cached q' = xq @ Wqk for the batch block
    ctx_ref: (BB, S, E)   f32 context accumulator (attn @ x); projected by wv at end
    """
    kv = pl.program_id(1)
    BB, S, E = xq_ref.shape
    _, TK, _ = xkv_ref.shape
    KP = wv_ref.shape[1]
    cd = compute_dtype

    @pl.when(kv == 0)
    def _init():
        ctx_ref[...] = jnp.zeros_like(ctx_ref)
        xq = xq_ref[...].reshape(BB * S, E).astype(cd)
        qp = jnp.dot(xq, wqk_ref[...].astype(cd), preferred_element_type=jnp.float32)
        qp_ref[...] = qp.reshape(BB, S, E).astype(qp_ref.dtype)

    xkv = xkv_ref[...].astype(cd)                                   # (BB, TK, E)
    scores = jnp.einsum('bqe,bke->bqk', qp_ref[...].astype(cd), xkv,
                        preferred_element_type=jnp.float32)         # (BB, S, TK)

    # softmax(dim=1) normalizes each key column over all S queries, all of which are
    # present here, so kv chunks are independent (no online-softmax rescaling).
    attn = _softmax_over_queries(scores)

    ctx_ref[...] += jnp.einsum('bqk,bke->bqe', attn.astype(cd), xkv,
                               preferred_element_type=jnp.float32)

    @pl.when(kv == pl.num_programs(1) - 1)
    def _finalize():
        ctx = ctx_ref[...].reshape(BB * S, E).astype(cd)
        out = jnp.dot(ctx, wv_ref[...].astype(cd), preferred_element_type=jnp.float32)
        o_ref[...] = out.reshape(BB, S, KP).astype(o_ref.dtype)


def self_attention(x, w, key_dim, *, block_kv=512, compute_dtype=jnp.bfloat16):
    """x: (B, S, E), w: (E, 3*key_dim) -> (B, S, key_dim); matches the PyTorch module.

    compute_dtype only affects MXU operands (softmax math is always f32). Use the
    bf16 default on v5e/v6e/v7x for speed; pass jnp.float32 for tight numerics.
    """
    B, S, E = x.shape
    assert w.shape == (E, 3 * key_dim)
    KP = _round_up(key_dim, 128)

    # ---- wrapper-side weight prep (algebraic folds + layout plumbing) -------------
    scale = 1.0 / jnp.sqrt(jnp.float32(key_dim))
    wq = w[:, :key_dim].astype(jnp.float32)
    wk = w[:, key_dim:2 * key_dim].astype(jnp.float32)
    wv = w[:, 2 * key_dim:].astype(jnp.float32)
    # Q/K fold: q @ k^T / sqrt(kd) == x @ ((wq*scale) @ wk^T) @ x^T.
    wqk = (wq * scale) @ wk.T                                        # (E, E)
    # V-hoist finalize weight, zero-padded so the output block is lane-dense.
    wv_p = jnp.pad(wv, ((0, 0), (0, KP - key_dim))) if KP != key_dim else wv

    # ---- batch block: ~128 projection rows, but keep grid[0] >= 2 whenever B >= 2 so
    # both v7x TensorCores get work on the "parallel" batch axis. ---------------------
    row_target = max(1, 128 // max(1, S))
    tc_cap = max(1, B // 2) if B >= 2 else 1
    BB = _largest_divisor_at_most(B, min(row_target, tc_cap))

    cd_bytes = jnp.dtype(compute_dtype).itemsize
    kernel_single = functools.partial(_self_attention_single_kernel,
                                      compute_dtype=compute_dtype)
    kernel_tiled = functools.partial(_self_attention_tiled_kernel,
                                     compute_dtype=compute_dtype)

    if S <= block_kv:
        # Single kv step: stream x exactly once (no separate xq / xkv views).
        est = (2 * BB * S * E * 4              # x block (double-buffered)
               + 2 * (E * E + E * KP) * 4      # weights
               + 2 * BB * S * KP * 4           # output block
               + 3 * BB * S * S * 4            # scores / exp / attn f32 tiles
               + 2 * BB * S * E * 4)           # q' / ctx live values
        out_padded = pl.pallas_call(
            kernel_single,
            out_shape=jax.ShapeDtypeStruct((B, S, KP), jnp.float32),
            grid_spec=pltpu.PrefetchScalarGridSpec(
                num_scalar_prefetch=0,
                grid=(B // BB,),
                in_specs=[
                    pl.BlockSpec((BB, S, E), lambda b: (b, 0, 0)),
                    # Weights: constant block index -> DMA'd once, stay VMEM-resident.
                    pl.BlockSpec((E, E), lambda b: (0, 0)),
                    pl.BlockSpec((E, KP), lambda b: (0, 0)),
                ],
                out_specs=pl.BlockSpec((BB, S, KP), lambda b: (b, 0, 0)),
            ),
            compiler_params=pltpu.CompilerParams(
                dimension_semantics=("parallel",), **_maybe_vmem_limit(est)),
        )(x, wqk, wv_p)
    else:
        # kv-tiled reduction. TK must be a multiple of 128 (lane dim of the score
        # tiles) for unmasked stores; assert instead of silently using TK = S.
        assert S % 128 == 0, (
            f"seq_len={S} > block_kv={block_kv} requires seq_len % 128 == 0 "
            "(pad the sequence) for the kv-tiled path")
        TK = 128
        t = (block_kv // 128) * 128
        while t >= 128:
            if S % t == 0:
                TK = t
                break
            t -= 128

        est = (BB * S * E * 4                  # xq block (single-buffered)
               + 2 * BB * TK * E * 4           # xkv chunk (double-buffered)
               + (E * E + E * KP) * 4          # weights (single-buffered)
               + 2 * BB * S * KP * 4           # output block
               + BB * S * E * (cd_bytes + 4)   # qp + ctx scratch
               + 3 * BB * S * TK * 4)          # scores / exp / attn f32 tiles

        out_padded = pl.pallas_call(
            kernel_tiled,
            out_shape=jax.ShapeDtypeStruct((B, S, KP), jnp.float32),
            grid_spec=pltpu.PrefetchScalarGridSpec(
                num_scalar_prefetch=0,
                grid=(B // BB, S // TK),
                in_specs=[
                    # Query-x block and weights never change along kv -> single-buffer.
                    pl.BlockSpec((BB, S, E), lambda b, kv: (b, 0, 0),
                                 pipeline_mode=pl.Buffered(1)),
                    pl.BlockSpec((BB, TK, E), lambda b, kv: (b, kv, 0)),
                    pl.BlockSpec((E, E), lambda b, kv: (0, 0),
                                 pipeline_mode=pl.Buffered(1)),
                    pl.BlockSpec((E, KP), lambda b, kv: (0, 0),
                                 pipeline_mode=pl.Buffered(1)),
                ],
                out_specs=pl.BlockSpec((BB, S, KP), lambda b, kv: (b, 0, 0)),
                scratch_shapes=[
                    pltpu.VMEM((BB, S, E), compute_dtype),   # cached q'
                    pltpu.VMEM((BB, S, E), jnp.float32),     # context accumulator
                ],
            ),
            compiler_params=pltpu.CompilerParams(
                dimension_semantics=("parallel", "arbitrary"),
                **_maybe_vmem_limit(est)),
        )(x, x, wqk, wv_p)

    # Strip the lane padding (wrapper-side slice only; kernel stores are lane-dense).
    return out_padded[..., :key_dim]


def self_attention_ref(x, w, key_dim):
    """Pure-JAX reference mirroring the PyTorch forward exactly."""
    qkv = jnp.matmul(x, w)
    q = qkv[:, :, :key_dim]
    k = qkv[:, :, key_dim:2 * key_dim]
    v = qkv[:, :, 2 * key_dim:]
    scores = jnp.matmul(q, jnp.swapaxes(k, -2, -1)) / jnp.sqrt(jnp.float32(key_dim))
    attn = jax.nn.softmax(scores, axis=1)   # dim=1, matching F.softmax(..., dim=1)
    return jnp.matmul(attn, v)


if __name__ == "__main__":
    # Module-consistent small shapes: batch=2, seq=8, embedding_dim=32, key_dim=16.
    B, S, E, K = 2, 8, 32, 16

    key = jax.random.PRNGKey(0)
    kx, kw = jax.random.split(key)
    x = jax.random.normal(kx, (B, S, E), dtype=jnp.float32)
    w = jax.random.normal(kw, (E, 3 * K), dtype=jnp.float32)   # ~ torch.randn(E, 3*K)

    # f32 MXU operands for a tight deterministic check (bf16 is the production default).
    out = self_attention(x, w, K, compute_dtype=jnp.float32)
    out = jax.block_until_ready(out)

    ref = self_attention_ref(x, w, K)
    assert out.shape == (B, S, K), out.shape
    assert jnp.allclose(out, ref, atol=2e-3, rtol=2e-3), "mismatch vs reference"

    print("KERNEL_OK")
</pallas_src>

<mosaic_0001>
module attributes {stable_mosaic.version = 11 : i64} {
  func.func @_self_attention_single_kernel(%arg0: i32, %arg1: memref<1x8x32xf32, #tpu.memory_space<vmem>>, %arg2: memref<32x32xf32, #tpu.memory_space<vmem>>, %arg3: memref<32x128xf32, #tpu.memory_space<vmem>>, %arg4: memref<1x8x128xf32, #tpu.memory_space<vmem>>) attributes {dimension_semantics = [#tpu.dimension_semantics<parallel>], iteration_bounds = array<i64: 2>, scalar_prefetch = 0 : i64, scratch_operands = 0 : i64, tpu.core_type = #tpu.core_type<tc>, window_params = [{transform_indices = @transform_0, window_bounds = array<i64: 1, 8, 32>}, {pipeline_mode = #tpu.pipeline_mode<synchronous>, transform_indices = @transform_1, window_bounds = array<i64: 32, 32>}, {pipeline_mode = #tpu.pipeline_mode<synchronous>, transform_indices = @transform_2, window_bounds = array<i64: 32, 128>}, {transform_indices = @transform_3, window_bounds = array<i64: 1, 8, 128>}]} {
    %c0 = arith.constant 0 : index
    %c0_0 = arith.constant 0 : index
    %c0_1 = arith.constant 0 : index
    %0 = vector.load %arg1[%c0, %c0_0, %c0_1] : memref<1x8x32xf32, #tpu.memory_space<vmem>>, vector<1x8x32xf32>
    %1 = vector.shape_cast %0 : vector<1x8x32xf32> to vector<8x32xf32>
    %c0_2 = arith.constant 0 : index
    %c0_3 = arith.constant 0 : index
    %2 = vector.load %arg2[%c0_2, %c0_3] : memref<32x32xf32, #tpu.memory_space<vmem>>, vector<32x32xf32>
    %cst = arith.constant dense<0.000000e+00> : vector<8x32xf32>
    %3 = tpu.matmul %1, %2, %cst {dimension_numbers = #tpu.dot_dimension_numbers<[1], [0], [0], [1], [0, 0, 1, 1], [], []>} : vector<8x32xf32>, vector<32x32xf32>, vector<8x32xf32> -> vector<8x32xf32>
    %4 = vector.shape_cast %3 : vector<8x32xf32> to vector<1x8x32xf32>
    "tpu.trace_start"() <{level = 10 : i32, message = "bqe,bke->bqk"}> : () -> ()
    %cst_4 = arith.constant dense<0.000000e+00> : vector<1x8x8xf32>
    %5 = tpu.matmul %4, %0, %cst_4 {dimension_numbers = #tpu.dot_dimension_numbers<[2], [2], [1], [1], [0, 0, 0, 1, 1, 1], [0], [0]>} : vector<1x8x32xf32>, vector<1x8x32xf32>, vector<1x8x8xf32> -> vector<1x8x8xf32>
    "tpu.trace_stop"() : () -> ()
    %cst_5 = arith.constant dense<0xFF800000> : vector<1x8xf32>
    %6 = vector.multi_reduction <maximumf>, %5, %cst_5 [1] : vector<1x8x8xf32> to vector<1x8xf32>
    %7 = vector.shape_cast %6 : vector<1x8xf32> to vector<1x1x8xf32>
    %8 = vector.broadcast %7 : vector<1x1x8xf32> to vector<1x8x8xf32>
    %9 = arith.subf %5, %8 : vector<1x8x8xf32>
    %10 = math.exp %9 : vector<1x8x8xf32>
    %cst_6 = arith.constant dense<0.000000e+00> : vector<1x8xf32>
    %11 = vector.multi_reduction <add>, %10, %cst_6 [1] : vector<1x8x8xf32> to vector<1x8xf32>
    %12 = vector.shape_cast %11 : vector<1x8xf32> to vector<1x1x8xf32>
    %13 = tpu.reciprocal %12 : vector<1x1x8xf32> -> vector<1x1x8xf32>
    %14 = vector.broadcast %13 : vector<1x1x8xf32> to vector<1x8x8xf32>
    %15 = arith.mulf %10, %14 : vector<1x8x8xf32>
    "tpu.trace_start"() <{level = 10 : i32, message = "bqk,bke->bqe"}> : () -> ()
    %cst_7 = arith.constant dense<0.000000e+00> : vector<1x8x32xf32>
    %16 = tpu.matmul %15, %0, %cst_7 {dimension_numbers = #tpu.dot_dimension_numbers<[2], [1], [1], [2], [0, 0, 0, 1, 1, 2], [0], [0]>} : vector<1x8x8xf32>, vector<1x8x32xf32>, vector<1x8x32xf32> -> vector<1x8x32xf32>
    "tpu.trace_stop"() : () -> ()
    %17 = vector.shape_cast %16 : vector<1x8x32xf32> to vector<8x32xf32>
    %c0_8 = arith.constant 0 : index
    %c0_9 = arith.constant 0 : index
    %18 = vector.load %arg3[%c0_8, %c0_9] : memref<32x128xf32, #tpu.memory_space<vmem>>, vector<32x128xf32>
    %cst_10 = arith.constant dense<0.000000e+00> : vector<8x128xf32>
    %19 = tpu.matmul %17, %18, %cst_10 {dimension_numbers = #tpu.dot_dimension_numbers<[1], [0], [0], [1], [0, 0, 1, 1], [], []>} : vector<8x32xf32>, vector<32x128xf32>, vector<8x128xf32> -> vector<8x128xf32>
    %20 = vector.shape_cast %19 : vector<8x128xf32> to vector<1x8x128xf32>
    %c0_11 = arith.constant 0 : index
    %c0_12 = arith.constant 0 : index
    %c0_13 = arith.constant 0 : index
    %21 = vector.load %arg4[%c0_11, %c0_12, %c0_13] : memref<1x8x128xf32, #tpu.memory_space<vmem>>, vector<1x8x128xf32>
    tpu.vector_store %arg4[%c0_11, %c0_12, %c0_13], %20 {strides = array<i32>} : memref<1x8x128xf32, #tpu.memory_space<vmem>>, vector<1x8x128xf32>,
    return
  }
  func.func @transform_0(%arg0: i32) -> (i32, i32, i32) {
    %c0_i32 = arith.constant 0 : i32
    %c0_i32_0 = arith.constant 0 : i32
    %c0_i32_1 = arith.constant 0 : i32
    return %arg0, %c0_i32, %c0_i32_0 : i32, i32, i32
  }
  func.func @transform_1(%arg0: i32) -> (i32, i32) {
    %c0_i32 = arith.constant 0 : i32
    %c0_i32_0 = arith.constant 0 : i32
    %c0_i32_1 = arith.constant 0 : i32
    return %c0_i32, %c0_i32_0 : i32, i32
  }
  func.func @transform_2(%arg0: i32) -> (i32, i32) {
    %c0_i32 = arith.constant 0 : i32
    %c0_i32_0 = arith.constant 0 : i32
    %c0_i32_1 = arith.constant 0 : i32
    return %c0_i32, %c0_i32_0 : i32, i32
  }
  func.func @transform_3(%arg0: i32) -> (i32, i32, i32) {
    %c0_i32 = arith.constant 0 : i32
    %c0_i32_0 = arith.constant 0 : i32
    %c0_i32_1 = arith.constant 0 : i32
    return %arg0, %c0_i32, %c0_i32_0 : i32, i32, i32
  }
}

</mosaic_0001>

<bundles_post_ra>
// kernel: tpu_custom_call.1
= control target key start
LH: loop header
LB: loop body
LE: loop exit
PB: predicated region body
PF: predicated region fallthrough
CT: control target
= control target key end

     0   :  { %8 = vsyncpa [#allocation3], 0  ;;  %s1227_s0 = inlined_call_operand.hbm [shape: f32[2,8,32], index: 0, kind: input, shape index: {}]   ;;  %s1228_s1 = inlined_call_operand.hbm [shape: f32[32,32], index: 1, kind: input, shape index: {}]   ;;  %s1229_s2 = inlined_call_operand.hbm [shape: f32[32,128], index: 2, kind: input, shape index: {}]   ;;  %s1230_s3 = inlined_call_operand.hbm [shape: f32[2,8,128], index: 3, kind: output, shape index: {}]  }
   0x1   :  { %10 = vsyncpa [#allocation3 + $0x1], 0 }
   0x2   :  { %11 = vsyncpa [#allocation6], 0 }
   0x3   :  { %12 = vsyncpa [#allocation4], 0 }
   0x4   :  { %14 = vsyncpa [#allocation4 + $0x1], 0  ;;  %s983_s12 = smov 0   ;;  %s985_s13 = smov 0  }
   0x5   :  { %s987_s14 = smov 0   ;;  %s989_s15 = smov 0  }
   0x6 LB: > { %s1004_s16 = sadd.s32 4294967295, %s952_s15   ;;  %s641_s17 = sadd.s32 4294967294, %s952_s15   ;;  %s952_s15 = sphi %s989_s15, %s1250_s15   ;;  %s948_s14 = sphi %s987_s14, %s1249_s14   ;;  %s944_s13 = sphi %s985_s13, %s1248_s13   ;;  %s940_s12 = sphi %s983_s12, %s1247_s12  }
   0x7   : > { %p40_p0 = scmp.ne.s32.totalorder %s944_s13, %s940_s12  ;;  %p1231_p1 = scmp.eq.s32.totalorder %s1004_s16, 0 }
   0x8   : > { %p112_p3 = scmp.eq.s32.totalorder %s641_s17, 1  ;;  %p642_p5 = scmp.ge.s32.totalorder %s952_s15, 1 }
   0x9   : > { %p1013_p4 = por %p1231_p1, %p40_p0  ;;  %p119_p7 = scmp.lt.s32.totalorder %s952_s15, 3 }
   0xa   : > { %p1018_p6 = por %p112_p3, %p40_p0  ;;  %s954_s21 = smov [#allocation5]  }
   0xb   : > { %s1234_s18 = scalar_select %p1013_p4, 1, 0 }
   0xc   : > { %s1235_s19 = scalar_select %p1018_p6, 1, 0 }
   0xd   : > { %p1023_p8 = pnand %p642_p5, %p119_p7  ;;  %s131_s22 = sshll.u32 %s954_s21, 4  ;;  %s1027_s22 = int_to_ptr.vmem [resolvable:$true] %s131_s22 }
   0xe   : > { %s955_s24 = smov [#allocation7]   ;;  %s796_s28 = scalar_lea.hbm %s1228_s1, 512 }
   0xf   : > { %p732_p9 = pneg %p1023_p8  ;;  %s144_s25 = sshll.u32 %s955_s24, 4  ;;  %s1038_s25 = int_to_ptr.vmem [resolvable:$true] %s144_s25 }
  0x10   : > { %p797_p12 = scmp.ne.s32.totalorder %s1228_s1, %s796_s28  ;;  %p803_p5 = scmp.lt.u32.totalorder %s796_s28, %s1228_s1 }
  0x11   : > { %p1034_p11 = pnand %p732_p9, %p1231_p1 }
  0x13   : > { %p798_p13 = pneg %p1034_p11 }
  0x15   : > { %p799_p0 = pnand %p798_p13, %p797_p12 }
  0x17   : > { %p800_p3 = pneg %p799_p0 }
  0x19   : > { %p805_p7 = pnand %p803_p5, %p800_p3 }
  0x1b   : > { %808 = shalt.err (!%p805_p7)
}
  0x1c   : > { %s809_s6 = scalar_lea.vmem %s1027_s22, 512  ;;  %p817_p2 = scmp.lt.s32.totalorder %s1027_s22, %s1027_s22 }
  0x1d   : > { %p810_p9 = scmp.ne.s32.totalorder %s1027_s22, %s809_s6  ;;  %p818_p12 = scmp.lt.s32.totalorder %s809_s6, %s809_s6 }
  0x1f   : > { %p812_p10 = pnand %p810_p9, %p798_p13  ;;  %p819_p0 = por %p818_p12, %p817_p2 }
  0x21   : > { %p813_p1 = pneg %p812_p10 }
  0x23   : > { %p820_p6 = pnand %p819_p0, %p813_p1 }
  0x25   : > { %823 = shalt.err (!%p820_p6)
}
  0x26   : > { %s956_s7 = smov 128   ;;  %s957_s8 = smov 8  }
  0x27   : > { %735 = dma.hbm_to_vmem [thread:$0]  (!%p1034_p11), %s1228_s1, 512, %s1027_s22, [#allocation6], %s956_s7, %s956_s7, %s957_s8  }
  0x28   : > { %s824_s21 = scalar_lea.hbm %s1229_s2, 512 }
  0x29   : > { %p825_p2 = scmp.ne.s32.totalorder %s1229_s2, %s824_s21  ;;  %p831_p10 = scmp.lt.u32.totalorder %s824_s21, %s1229_s2 }
  0x2b   : > { %p827_p1 = pnand %p825_p2, %p798_p13 }
  0x2d   : > { %p828_p6 = pneg %p827_p1 }
  0x2f   : > { %p833_p3 = pnand %p831_p10, %p828_p6 }
  0x31   : > { %836 = shalt.err (!%p833_p3)
}
  0x32   : > { %s837_s22 = scalar_lea.vmem %s1038_s25, 512  ;;  %p845_p12 = scmp.lt.s32.totalorder %s1038_s25, %s1038_s25 }
  0x33   : > { %p838_p5 = scmp.ne.s32.totalorder %s1038_s25, %s837_s22  ;;  %p846_p0 = scmp.lt.s32.totalorder %s837_s22, %s837_s22 }
  0x35   : > { %p840_p7 = pnand %p838_p5, %p798_p13  ;;  %p847_p2 = por %p846_p0, %p845_p12 }
  0x37   : > { %p841_p9 = pneg %p840_p7 }
  0x39   : > { %p848_p1 = pnand %p847_p2, %p841_p9 }
  0x3b   : > { %851 = shalt.err (!%p848_p1)
}
  0x3c   : > { %738 = dma.hbm_to_vmem [thread:$0]  (!%p1034_p11), %s1229_s2, 512, %s1038_s25, [#allocation6], %s956_s7, %s956_s7, %s957_s8  }
  0x3d   : > { %s1093_s4 = sadd.s32 1, %s952_s15   ;;  %s27_s23 = sadd.s32 1, %s948_s14 }
  0x3e   : > { %s24_s5 = ssub.s32 %s952_s15, %s1093_s4  ;;  %p34_p13 = scmp.ne.s32.totalorder %s948_s14, %s944_s13 }
  0x3f   : > { %p25_p6 = scmp.eq.s32.totalorder %s24_s5, 0  ;;  %p35_p10 = scmp.eq.s32.totalorder %s952_s15, 0 }
  0x40   : > { %p1238_p3 = scmp.eq.s32.totalorder %s1004_s16, 1  ;;  %p749_p7 = scmp.lt.s32.totalorder %s952_s15, 2 }
  0x41   : > { %s1109_s9 = scalar_select %p25_p6, %s948_s14, %s27_s23  }
  0x42   : > { %p1103_p5 = por %p1238_p3, %p34_p13  ;;  %p36_p9 = por %p35_p10, %p34_p13 }
  0x43   : > { %s158_s10 = sand.u32 1, %s948_s14   ;;  %s647_s25 = sshll.u32 %s952_s15, 7 }
  0x44   : > { %s1239_s6 = scalar_select %p1103_p5, 1, 0 }
  0x45   : > { %s646_s11 = sshll.u32 %s158_s10, 3  ;;  %s1116_s17 = scalar_lea.hbm %s1227_s0, %s647_s25 }
  0x46   : > { %s162_s21 = scalar_lea.vmem [#allocation2], %s646_s11  ;;  %p1120_p11 = pnand %p749_p7, %p36_p9 }
  0x47   : > { %s169_s24 = sshll.u32 %s162_s21, 4  ;;  %s159_s27 = scalar_lea.sflag [#allocation3], %s158_s10  ;;  %s1118_s24 = int_to_ptr.vmem [resolvable:$true] %s169_s24 }
  0x48   : > { %s852_s28 = scalar_lea.hbm %s1116_s17, 128  ;;  %p854_p0 = pneg %p1120_p11 }
  0x49   : > { %p853_p12 = scmp.ne.s32.totalorder %s1116_s17, %s852_s28  ;;  %s857_s30 = scalar_lea.hbm %s1227_s0, 256 }
  0x4a   : > { %p858_p13 = scmp.lt.u32.totalorder %s1116_s17, %s1227_s0  ;;  %p859_p6 = scmp.lt.u32.totalorder %s857_s30, %s852_s28 }
  0x4b   : > { %p855_p2 = pnand %p854_p0, %p853_p12  ;;  %p861_p3 = scmp.lt.u32.totalorder %s852_s28, %s1116_s17 }
  0x4c   : > { %p860_p10 = por %p859_p6, %p858_p13 }
  0x4d   : > { %p856_p1 = pneg %p855_p2 }
  0x4e   : > { %p862_p7 = por %p861_p3, %p860_p10 }
  0x50   : > { %p863_p9 = pnand %p862_p7, %p856_p1 }
  0x52   : > { %866 = shalt.err (!%p863_p9)
}
  0x53   : > { %s867_s10 = scalar_lea.vmem %s1118_s24, 128  ;;  %s958_s11 = smov [#allocation2]  }
  0x54   : > { %p868_p12 = scmp.ne.s32.totalorder %s1118_s24, %s867_s10  ;;  %s872_s25 = sshll.u32 %s958_s11, 4  ;;  %s873_s25 = int_to_ptr.vmem [resolvable:$false] %s872_s25 }
  0x55   : > { %s874_s7 = scalar_lea.vmem %s873_s25, 256  ;;  %p875_p4 = scmp.lt.s32.totalorder %s1118_s24, %s873_s25 }
  0x56   : > { %p870_p2 = pnand %p868_p12, %p854_p0  ;;  %p876_p13 = scmp.lt.s32.totalorder %s874_s7, %s867_s10 }
  0x58   : > { %p871_p5 = pneg %p870_p2  ;;  %p877_p6 = por %p876_p13, %p875_p4 }
  0x5a   : > { %p878_p10 = pnand %p877_p6, %p871_p5 }
  0x5c   : > { %881 = shalt.err (!%p878_p10)
}
  0x5d   : > { %742 = dma.hbm_to_vmem [thread:$0]  (!%p1120_p11), %s1116_s17, 128, %s1118_s24, %s159_s27  }
  0x5e   : > { %178 = sbr.rel (%p1023_p8) target bundleno = 1031 (0x407), region = 32  ;;  %s1152_s8 = sand.u32 (!%p1023_p8), 1, %s944_s13  }
  0x5f   : > { %s649_s21 = sshll.u32 (!%p1023_p8), %s1152_s8, 3  ;;  %s181_s28 = scalar_lea.sflag (!%p1023_p8), [#allocation3], %s1152_s8 }
  0x60   : > { %s184_s22 = scalar_lea.vmem (!%p1023_p8), [#allocation2], %s649_s21  ;;  %p1241_p4 = scmp.ne.s32.totalorder (!%p1023_p8), %s1234_s18, 0 }
  0x65   : > { %927 = dma.done.wait (%p1241_p4), %s181_s28, 128  }
  0x66   : > { %929 = vsyncadd (%p1241_p4), %s181_s28, 4294967168  ;;  %p1242_p5 = scmp.eq.s32.totalorder %s1004_s16, 0 }
  0x68   : > { %931 = dma.done.wait (%p1242_p5), [#allocation6], 1024   ;;  %p1243_p8 = pmov %p1242_p5 }
  0x69   : > { %v959_v0 = vmov 0.0|0.0   ;;  %vm960_vm0 = vmmov 0   ;;  %v961_v1 = vmov 0.0   ;;  %v216_v2 = vld [vmem:[#allocation5] sm:$0xff]  ;;  %v217_v3 = vld [vmem:[#allocation5 + $0x8] sm:$0xff]  ;;  %v218_v4 = vld [vmem:[#allocation5 + $0x10] sm:$0xff] }
  0x6a   : > { %933 = vsyncadd (%p1243_p8), [#allocation6], 4294966272  ;;  %708 = vmatprep.subr.bf16.mxu0 %v959_v0  ;;  %684 = vmatprep.mubr.msk.f32.mxu0 %vm960_vm0, %v961_v1  ;;  %v709_v5 = vpack.c.bf16 %v217_v3, %v216_v2  ;;  %v219_v6 = vld [vmem:[#allocation5 + $0x18] sm:$0xff]  ;;  %vm220_vm1 = vcmask 261120   ;;  %v460_v11 = vld [vmem:[#allocation7] sm:$0xff]  ;;  %vm367_vm2 = vcmask 64512  }
  0x6b   : > { %687 = vmatprep.subr.mxu1 %v961_v1  ;;  %689 = vmatprep.mubr.msk.f32.mxu1 %vm960_vm0, %v961_v1  ;;  %v215_v7 = vld [vmem:[%s184_s22] sm:$0xff]  ;;  %v712_v8 = vpack.c.bf16 %v219_v6, %v218_v4  ;;  %v461_v12 = vld [vmem:[#allocation7 + $0x8] sm:$0xff]  ;;  %s214_s18 = scalar_lea.vmem [#allocation8], %s649_s21  ;;  %s659_s17 = sshll.u32 %s1004_s16, 7 }
  0x6c   : > { %688 = vmatpush3.xpose.msk.msra.mxu1 %vm220_vm1, %v215_v7  ;;  %710 = vmatpush3.bf16.msra.mxu0 %v709_v5  ;;  %v462_v13 = vld [vmem:[#allocation7 + $0x10] sm:$0xff]  ;;  %v715_v14 = vpack.c.bf16 %v461_v12, %v460_v11  ;;  %v463_v15 = vld [vmem:[#allocation7 + $0x18] sm:$0xff]  ;;  %s552_s20 = sshll.u32 %s214_s18, 4  ;;  %s1185_s27 = scalar_lea.hbm %s1230_s3, %s659_s17  ;;  %s1180_s20 = int_to_ptr.vmem [resolvable:$true] %s552_s20 }
  0x6d   : > { %692 = vmatprep.subr.mxu1 %v961_v1  ;;  %711 = vmatprep.subr.bf16.mxu0 %v959_v0  ;;  %v718_v16 = vpack.c.bf16 %v463_v15, %v462_v13  ;;  %s539_s29 = scalar_lea.sflag [#allocation4], %s1152_s8  ;;  %s882_s30 = scalar_lea.vmem %s1180_s20, 128 }
  0x6e   : > { %p883_p11 = scmp.ne.s32.totalorder %s1180_s20, %s882_s30  ;;  %p1244_p0 = scmp.ne.s32.totalorder %s1239_s6, 0 }
  0x6f   : > { %s962_s16 = smov [#allocation8]  }
  0x70   : > { %713 = vmatpush3.bf16.msra.mxu0 %v712_v8  ;;  %p884_p1 = pnand %p883_p11, %p1244_p0  ;;  %s886_s23 = sshll.u32 %s962_s16, 4  ;;  %s887_s23 = int_to_ptr.vmem [resolvable:$false] %s886_s23 }
  0x71   : > { %714 = vmatprep.subr.bf16.mxu0 %v959_v0  ;;  %s888_s5 = scalar_lea.vmem %s887_s23, 256  ;;  %p889_p7 = scmp.lt.s32.totalorder %s1180_s20, %s887_s23 }
  0x72   : > { %p885_p3 = pneg %p884_p1  ;;  %p890_p9 = scmp.lt.s32.totalorder %s888_s5, %s882_s30 }
  0x73   : > { %685 = vmatmul.mubr.msk.f32.vlgmr.msra.gmra.mrb[0].mxu0 %vm220_vm1, %v215_v7 }
  0x74   : > { %705 = vmatprep.mubr.msk.f32.mxu0 %vm960_vm0, %v961_v1  ;;  %716 = vmatpush3.bf16.msra.mxu0 %v715_v14  ;;  %p891_p12 = por %p890_p9, %p889_p7 }
  0x75   : > { %717 = vmatprep.subr.bf16.mxu0 %v959_v0 }
  0x76   : > { %p892_p2 = pnand %p891_p12, %p885_p3 }
  0x78   : > { %719 = vmatpush3.bf16.msra.mxu0 %v718_v16 }
 0x146   : > { %v290_v9 = vpop.f32.mrb[0].mxu0 }
 0x147   : > { %v686_v10 = vpop.f32.mrb[1].mxu0  ;;  %690 = vmatmul.mubr.msk.f32.vlgmr.msra.gmra.mrb[0].mxu1 %vm220_vm1, %v290_v9 }
 0x148   : > { %693 = vmatpush3.msra.mxu1 %v215_v7  ;;  %694 = vmatprep.mubr.msk.f32.mxu1 %vm960_vm0, %v961_v1 }
 0x21a   : > { %v363_v17 = vpop.f32.mrb[0].mxu1 }
 0x21b   : > { %v368_v18 = vsel %vm367_vm2, %v363_v17, -inf  ;;  %v691_v19 = vpop.f32.mrb[1].mxu1 }
 0x21c   : > { %v369_v20 = vrot.slane %v368_v18, 4 }
 0x21e   : > { %v370_v21 = vmax.f32 %v368_v18, %v369_v20 }
 0x220   : > { %v371_v22 = vrot.slane %v370_v21, 2 }
 0x222   : > { %v372_v23 = vmax.f32 %v370_v21, %v371_v22 }
 0x224   : > { %v373_v24 = vrot.slane %v372_v23, 1 }
 0x226   : > { %v374_v25 = vmax.f32 %v372_v23, %v373_v24 }
 0x228   : > { %v375_v26 = vsub.f32 %v363_v17, %v374_v25 }
 0x22a   : > { %v376_v27 = vmul.f32 1.442695, %v375_v26 }
 0x22c   : > { %792 = vpow2.f32 %v376_v27 }
 0x236   : > { %v793_v28 = vpop.eup %792 }
 0x237   : > { %v378_v29 = vsel %vm367_vm2, %v793_v28, 0.0 }
 0x238   : > { %v379_v30 = vrot.slane %v378_v29, 4 }
 0x23a   : > { %v380_v31 = vadd.f32 %v379_v30, %v378_v29 }
 0x23c   : > { %v381_v32 = vrot.slane %v380_v31, 2 }
 0x23e   : > { %v382_v33 = vadd.f32 %v381_v32, %v380_v31 }
 0x240   : > { %v383_v34 = vrot.slane %v382_v33, 1 }
 0x242   : > { %v384_v35 = vadd.f32 %v383_v34, %v382_v33 }
 0x244   : > { %794 = vrcp.f32 %v384_v35 }
 0x24e   : > { %v795_v36 = vpop.eup %794 }
 0x24f   : > { %v386_v37 = vmul.f32 %v795_v36, %v793_v28 }
 0x251   : > { %695 = vmatmul.mubr.msk.f32.vlgmr.msra.gmra.mrb[2].mxu1 %vm367_vm2, %v386_v37 }
 0x324   : > { %v456_v38 = vpop.f32.mrb[2].mxu1 }
 0x325   : > { %v696_v39 = vpop.f32.mrb[3].mxu1  ;;  %706 = vmatmul.mubr.msk.f32.vlgmr.msra.gmra.mrb[2].mxu0 %vm220_vm1, %v456_v38 }
 0x3f8   : > { %v533_v40 = vpop.f32.mrb[2].mxu0 }
 0x3f9   : > { %537 = vst [vmem:[%s214_s18] sm:$0xff] %v533_v40  ;;  %v707_v41 = vpop.f32.mrb[3].mxu0 }
 0x3fa   : > { %895 = shalt.err (!%p892_p2)
}
 0x3fb   : > { %s896_s10 = scalar_lea.hbm %s1185_s27, 128  ;;  %s900_s7 = scalar_lea.hbm %s1230_s3, 256 }
 0x3fc   : > { %p897_p13 = scmp.ne.s32.totalorder %s1185_s27, %s896_s10  ;;  %p901_p4 = scmp.lt.u32.totalorder %s1185_s27, %s1230_s3 }
 0x3fd   : > { %p902_p5 = scmp.lt.u32.totalorder %s900_s7, %s896_s10  ;;  %p904_p11 = scmp.lt.u32.totalorder %s896_s10, %s1185_s27 }
 0x3fe   : > { %p898_p6 = pnand %p897_p13, %p1244_p0 }
 0x3ff   : > { %p903_p8 = por %p902_p5, %p901_p4 }
 0x400   : > { %p899_p10 = pneg %p898_p6 }
 0x401   : > { %p905_p1 = por %p904_p11, %p903_p8 }
 0x403   : > { %p906_p3 = pnand %p905_p1, %p899_p10 }
 0x405   : > { %909 = shalt.err (!%p906_p3)
}
 0x406   : > { %730 = dma.vmem_to_hbm [thread:$0]  (%p1244_p0), %s1180_s20, 128, %s1185_s27, %s539_s29  }
 0x407 PF: > { %s564_s28 = sand.u32 1, %s940_s12   ;;  %p1245_p7 = scmp.ne.s32.totalorder %s1235_s19, 0 }
 0x408   : > { %p1246_p9 = scmp.ge.s32.totalorder %s952_s15, 2  ;;  %s565_s22 = scalar_lea.sflag [#allocation4], %s564_s28 }
 0x40a   : > { %p744_p12 = pnand %p1246_p9, %p1245_p7 }
 0x40c   : > { %935 = dma.done.wait (!%p744_p12), %s565_s22, 128  }
 0x40d   : > { %937 = vsyncadd (!%p744_p12), %s565_s22, 4294967168  ;;  %p17_p2 = scmp.ge.s32.totalorder %s1093_s4, 4   ;;  %s1247_s12 = smov %s944_s13 }
 0x40e   : > { %s1248_s13 = smov %s948_s14  ;;  %s1249_s14 = smov %s1109_s9 }
 0x40f   : > { %s1250_s15 = smov %s1093_s4  ;;  %19 = sbr.rel (!%p17_p2) target bundleno = 6 (0x6), region = 85 }
 0x416   :  { %570 = vsyncpa [#allocation3], 1 }
 0x417   :  { %572 = vsyncpa [#allocation3 + $0x1], 1 }
 0x418   :  { %573 = vsyncpa [#allocation6], 1 }
 0x419   :  { %574 = vsyncpa [#allocation4], 1 }
 0x41a   :  { %576 = vsyncpa [#allocation4 + $0x1], 1 }

</bundles_post_ra>
